<compile_context>
chip_gen: v7x
topology: tpu7x:2x2x1
jax: 0.10.0
libtpu: 0.0.40
codegen_flags: <defaults>
</compile_context>

<pallas_src>
import jax
import jax.numpy as jnp
from jax import lax
from jax.experimental import pallas as pl
from jax.experimental.pallas import tpu as pltpu


def _round_up(x, m):
    return ((x + m - 1) // m) * m


def _ibp_linear_kernel(cr_ref, w_ref, bias_ref, out_ref, acc_ref):
    # cr_ref   : (2, tk)   row 0 = center, row 1 = radius (radius >= 0)
    # w_ref    : (tn, tk)  weight tile in natural (out, in) layout
    # bias_ref : (1, tn)
    # out_ref  : (2, tn)   row 0 = lower, row 1 = upper   (lane-dense output)
    # acc_ref  : (2, tn)   f32 scratch: row 0 accumulates m, row 1 accumulates d
    k = pl.program_id(1)

    @pl.when(k == 0)
    def _():
        acc_ref[...] = jnp.zeros_like(acc_ref)

    w = w_ref[...]                       # (tn, tk), native dtype (f32 or bf16)
    c = cr_ref[0:1, :]                   # (1, tk)
    r = cr_ref[1:2, :]                   # (1, tk)

    contract = (((1,), (1,)), ((), ()))  # contract the in_dim axis of both
    m = lax.dot_general(c, w, contract, preferred_element_type=jnp.float32)
    d = lax.dot_general(r, jnp.abs(w), contract, preferred_element_type=jnp.float32)
    acc_ref[...] += jnp.concatenate([m, d], axis=0)

    @pl.when(k == pl.num_programs(1) - 1)
    def _():
        mt = acc_ref[0:1, :]
        dt = acc_ref[1:2, :]
        b = bias_ref[...].astype(jnp.float32)
        out_ref[...] = jnp.concatenate([mt - dt + b, mt + dt + b], axis=0)


def linear_transformer_forward(bounds, weights, bias=None, *,
                               tk_max=512,
                               vmem_limit_bytes=48 * 1024 * 1024):
    """bounds: (in_dim, 2), weights: (out_dim, in_dim), bias: (out_dim,) or None.
    Returns (out_dim, 2) -- same semantics as LinearTransformer.forward."""
    out_dim, in_dim = weights.shape
    assert bounds.shape == (in_dim, 2)

    if bias is None:
        bias = jnp.zeros((out_dim,), jnp.float32)

    # center / radius form (algebraically identical to the W+/W- split).
    b32 = bounds.astype(jnp.float32)
    c = (b32[:, 0] + b32[:, 1]) * 0.5
    r = (b32[:, 1] - b32[:, 0]) * 0.5
    cr = jnp.stack([c, r], axis=0).astype(weights.dtype)       # (2, in_dim)

    # ---- K (in_dim) tiling --------------------------------------------------
    if in_dim <= tk_max:
        tk = in_dim                       # full reduction per step, K grid = 1
        in_pad = in_dim
    else:
        tk = tk_max                       # multiple of 128
        in_pad = _round_up(in_dim, tk)

    # ---- N (out_dim) tiling: largest lane-dense tile within the VMEM budget -
    elem = jnp.dtype(weights.dtype).itemsize
    tn = 128
    for cand in (2048, 1024, 512, 256):
        # ~2 pipeline buffers of the weight tile + |W| temp + headroom.
        if 4 * cand * tk * elem <= 16 * 1024 * 1024:
            tn = cand
            break
    tn = min(tn, _round_up(out_dim, 128))
    out_pad = _round_up(out_dim, tn)

    w = weights
    bias2 = bias.reshape(1, out_dim)
    if in_pad != in_dim or out_pad != out_dim:
        w = jnp.pad(w, ((0, out_pad - out_dim), (0, in_pad - in_dim)))
        bias2 = jnp.pad(bias2, ((0, 0), (0, out_pad - out_dim)))
        cr = jnp.pad(cr, ((0, 0), (0, in_pad - in_dim)))

    grid = (out_pad // tn, in_pad // tk)   # reduction axis last

    out = pl.pallas_call(
        _ibp_linear_kernel,
        out_shape=jax.ShapeDtypeStruct((2, out_pad), jnp.float32),
        grid_spec=pltpu.PrefetchScalarGridSpec(
            num_scalar_prefetch=0,
            grid=grid,
            in_specs=[
                pl.BlockSpec((2, tk), lambda j, k: (0, k)),    # center/radius
                pl.BlockSpec((tn, tk), lambda j, k: (j, k)),   # weight tile (natural layout)
                pl.BlockSpec((1, tn), lambda j, k: (0, j)),    # bias tile
            ],
            out_specs=pl.BlockSpec((2, tn), lambda j, k: (0, j)),
            scratch_shapes=[pltpu.VMEM((2, tn), jnp.float32)],
        ),
        compiler_params=pltpu.CompilerParams(
            dimension_semantics=("parallel", "arbitrary"),
            vmem_limit_bytes=vmem_limit_bytes,
        ),
    )(cr, w, bias2)

    return out[:, :out_dim].T              # (out_dim, 2), PyTorch convention


def _reference(bounds, weights, bias):
    wp = jnp.maximum(weights, 0.0)
    wn = jnp.minimum(weights, 0.0)
    lower = wp @ bounds[:, 0] + wn @ bounds[:, 1]
    upper = wp @ bounds[:, 1] + wn @ bounds[:, 0]
    return jnp.stack([lower, upper], axis=1) + bias.reshape(-1, 1)


if __name__ == "__main__":
    in_dim, out_dim = 32, 256

    key = jax.random.PRNGKey(0)
    k_w, k_b, k_c, k_r = jax.random.split(key, 4)

    weights = jax.random.normal(k_w, (out_dim, in_dim), jnp.float32) * 0.1
    bias = jax.random.normal(k_b, (out_dim,), jnp.float32) * 0.05

    center = jax.random.normal(k_c, (in_dim,), jnp.float32)
    radius = jnp.abs(jax.random.normal(k_r, (in_dim,), jnp.float32)) * 0.1
    bounds = jnp.stack([center - radius, center + radius], axis=1)  # (in_dim, 2)

    out = linear_transformer_forward(bounds, weights, bias)
    out = jax.block_until_ready(out)

    ref = _reference(bounds, weights, bias)
    assert out.shape == (out_dim, 2)
    assert jnp.allclose(out, ref, atol=2e-5, rtol=1e-5), "mismatch vs reference"
    # same invariant as the torch module's assert (holds exactly: d >= 0)
    assert bool(jnp.all(out[:, 0] <= out[:, 1]))

    print("KERNEL_OK")
</pallas_src>

<mosaic_0001>
module attributes {stable_mosaic.version = 11 : i64} {
  func.func @_ibp_linear_kernel(%arg0: i32, %arg1: i32, %arg2: memref<2x32xf32, #tpu.memory_space<vmem>>, %arg3: memref<256x32xf32, #tpu.memory_space<vmem>>, %arg4: memref<1x256xf32, #tpu.memory_space<vmem>>, %arg5: memref<2x256xf32, #tpu.memory_space<vmem>>, %arg6: memref<2x256xf32, #tpu.memory_space<vmem>>) attributes {dimension_semantics = [#tpu.dimension_semantics<parallel>, #tpu.dimension_semantics<arbitrary>], iteration_bounds = array<i64: 1, 1>, scalar_prefetch = 0 : i64, scratch_operands = 1 : i64, tpu.core_type = #tpu.core_type<tc>, window_params = [{transform_indices = @transform_0, window_bounds = array<i64: 2, 32>}, {transform_indices = @transform_1, window_bounds = array<i64: 256, 32>}, {transform_indices = @transform_2, window_bounds = array<i64: 1, 256>}, {transform_indices = @transform_3, window_bounds = array<i64: 2, 256>}]} {
    %c0_i32 = arith.constant 0 : i32
    %0 = arith.cmpi eq, %arg1, %c0_i32 : i32
    %1 = arith.extui %0 : i1 to i32
    %c0_i32_0 = arith.constant 0 : i32
    %2 = arith.cmpi ne, %1, %c0_i32_0 : i32
    scf.if %2 {
      %cst_12 = arith.constant 0.000000e+00 : f32
      %16 = vector.broadcast %cst_12 : f32 to vector<2x256xf32>
      %c0_13 = arith.constant 0 : index
      %c0_14 = arith.constant 0 : index
      %17 = vector.load %arg6[%c0_13, %c0_14] : memref<2x256xf32, #tpu.memory_space<vmem>>, vector<2x256xf32>
      tpu.vector_store %arg6[%c0_13, %c0_14], %16 {strides = array<i32>} : memref<2x256xf32, #tpu.memory_space<vmem>>, vector<2x256xf32>,
    } else {
    }
    %c0 = arith.constant 0 : index
    %c0_1 = arith.constant 0 : index
    %3 = vector.load %arg3[%c0, %c0_1] : memref<256x32xf32, #tpu.memory_space<vmem>>, vector<256x32xf32>
    %c0_2 = arith.constant 0 : index
    %c0_3 = arith.constant 0 : index
    %4 = vector.load %arg2[%c0_2, %c0_3] : memref<2x32xf32, #tpu.memory_space<vmem>>, vector<1x32xf32>
    %c1 = arith.constant 1 : index
    %c0_4 = arith.constant 0 : index
    %5 = vector.load %arg2[%c1, %c0_4] : memref<2x32xf32, #tpu.memory_space<vmem>>, vector<1x32xf32>
    %cst = arith.constant dense<0.000000e+00> : vector<1x256xf32>
    %6 = tpu.matmul %4, %3, %cst {dimension_numbers = #tpu.dot_dimension_numbers<[1], [1], [0], [0], [0, 0, 1, 0], [], []>} : vector<1x32xf32>, vector<256x32xf32>, vector<1x256xf32> -> vector<1x256xf32>
    %7 = math.absf %3 : vector<256x32xf32>
    %cst_5 = arith.constant dense<0.000000e+00> : vector<1x256xf32>
    %8 = tpu.matmul %5, %7, %cst_5 {dimension_numbers = #tpu.dot_dimension_numbers<[1], [1], [0], [0], [0, 0, 1, 0], [], []>} : vector<1x32xf32>, vector<256x32xf32>, vector<1x256xf32> -> vector<1x256xf32>
    %c0_6 = arith.constant 0 : index
    %c0_7 = arith.constant 0 : index
    %9 = vector.load %arg6[%c0_6, %c0_7] : memref<2x256xf32, #tpu.memory_space<vmem>>, vector<2x256xf32>
    %10 = tpu.concatenate %6, %8 in 0 : vector<1x256xf32>, vector<1x256xf32> -> vector<2x256xf32>
    %11 = arith.addf %9, %10 : vector<2x256xf32>
    %c0_8 = arith.constant 0 : index
    %c0_9 = arith.constant 0 : index
    %12 = vector.load %arg6[%c0_8, %c0_9] : memref<2x256xf32, #tpu.memory_space<vmem>>, vector<2x256xf32>
    tpu.vector_store %arg6[%c0_8, %c0_9], %11 {strides = array<i32>} : memref<2x256xf32, #tpu.memory_space<vmem>>, vector<2x256xf32>,
    %c0_i32_10 = arith.constant 0 : i32
    %13 = arith.cmpi eq, %arg1, %c0_i32_10 : i32
    %14 = arith.extui %13 : i1 to i32
    %c0_i32_11 = arith.constant 0 : i32
    %15 = arith.cmpi ne, %14, %c0_i32_11 : i32
    scf.if %15 {
      %c0_12 = arith.constant 0 : index
      %c0_13 = arith.constant 0 : index
      %16 = vector.load %arg6[%c0_12, %c0_13] : memref<2x256xf32, #tpu.memory_space<vmem>>, vector<1x256xf32>
      %c1_14 = arith.constant 1 : index
      %c0_15 = arith.constant 0 : index
      %17 = vector.load %arg6[%c1_14, %c0_15] : memref<2x256xf32, #tpu.memory_space<vmem>>, vector<1x256xf32>
      %c0_16 = arith.constant 0 : index
      %c0_17 = arith.constant 0 : index
      %18 = vector.load %arg4[%c0_16, %c0_17] : memref<1x256xf32, #tpu.memory_space<vmem>>, vector<1x256xf32>
      %19 = arith.subf %16, %17 : vector<1x256xf32>
      %20 = arith.addf %19, %18 : vector<1x256xf32>
      %21 = arith.addf %16, %17 : vector<1x256xf32>
      %22 = arith.addf %21, %18 : vector<1x256xf32>
      %23 = tpu.concatenate %20, %22 in 0 : vector<1x256xf32>, vector<1x256xf32> -> vector<2x256xf32>
      %c0_18 = arith.constant 0 : index
      %c0_19 = arith.constant 0 : index
      %24 = vector.load %arg5[%c0_18, %c0_19] : memref<2x256xf32, #tpu.memory_space<vmem>>, vector<2x256xf32>
      tpu.vector_store %arg5[%c0_18, %c0_19], %23 {strides = array<i32>} : memref<2x256xf32, #tpu.memory_space<vmem>>, vector<2x256xf32>,
    } else {
    }
    return
  }
  func.func @transform_0(%arg0: i32, %arg1: i32) -> (i32, i32) {
    %c0_i32 = arith.constant 0 : i32
    %c0_i32_0 = arith.constant 0 : i32
    return %c0_i32, %arg1 : i32, i32
  }
  func.func @transform_1(%arg0: i32, %arg1: i32) -> (i32, i32) {
    %c0_i32 = arith.constant 0 : i32
    return %arg0, %arg1 : i32, i32
  }
  func.func @transform_2(%arg0: i32, %arg1: i32) -> (i32, i32) {
    %c0_i32 = arith.constant 0 : i32
    %c0_i32_0 = arith.constant 0 : i32
    return %c0_i32, %arg0 : i32, i32
  }
  func.func @transform_3(%arg0: i32, %arg1: i32) -> (i32, i32) {
    %c0_i32 = arith.constant 0 : i32
    %c0_i32_0 = arith.constant 0 : i32
    return %c0_i32, %arg0 : i32, i32
  }
}

</mosaic_0001>

<bundles_post_ra>
// kernel: tpu_custom_call.1
= control target key start
LH: loop header
LB: loop body
LE: loop exit
PB: predicated region body
PF: predicated region fallthrough
CT: control target
= control target key end

     0   :  { %vm54_vm0 = vcmask 261120   ;;  %s995_s0 = inlined_call_operand.vmem [shape: f32[2,32], index: 0, kind: input, shape index: {}]   ;;  %s996_s1 = inlined_call_operand.vmem [shape: f32[256,32], index: 1, kind: input, shape index: {}]   ;;  %s997_s2 = inlined_call_operand.vmem [shape: f32[1,256], index: 2, kind: input, shape index: {}]   ;;  %s998_s3 = inlined_call_operand.hbm [shape: f32[2,256], index: 3, kind: output, shape index: {}]  }
   0x1   :  { %v36_v0 = vld [vmem:[%s996_s1 + $0x80] sm:$0xff]  ;;  %v37_v1 = vld [vmem:[%s996_s1 + $0x88] sm:$0xff]  ;;  %vm803_vm1 = vmpackc.low %vm54_vm0, %vm54_vm0 }
   0x2   :  { %v20_v2 = vld [vmem:[%s996_s1] sm:$0xff]  ;;  %v241_v4 = vand.u32 2147483647, %v36_v0  ;;  %v242_v5 = vand.u32 2147483647, %v37_v1  ;;  %v646_v6 = vpack.c.bf16 %v37_v1, %v36_v0  ;;  %v21_v7 = vld [vmem:[%s996_s1 + $0x8] sm:$0xff] }
   0x3   :  { %v38_v8 = vld [vmem:[%s996_s1 + $0x90] sm:$0xff]  ;;  %v225_v9 = vand.u32 2147483647, %v20_v2  ;;  %v226_v10 = vand.u32 2147483647, %v21_v7  ;;  %v649_v11 = vpack.c.bf16 %v21_v7, %v20_v2  ;;  %v39_v12 = vld [vmem:[%s996_s1 + $0x98] sm:$0xff] }
   0x4   :  { %v694_v13 = vpack.c.bf16 %v242_v5, %v241_v4  ;;  %648 = vmatprep.subr.msk.bf16.mxu0 %vm803_vm1, %v646_v6  ;;  %v243_v14 = vand.u32 2147483647, %v38_v8  ;;  %v244_v15 = vand.u32 2147483647, %v39_v12  ;;  %v652_v16 = vpack.c.bf16 %v39_v12, %v38_v8  ;;  %v22_v17 = vld [vmem:[%s996_s1 + $0x10] sm:$0xff]  ;;  %v23_v18 = vld [vmem:[%s996_s1 + $0x18] sm:$0xff] }
   0x5   :  { %v697_v19 = vpack.c.bf16 %v226_v10, %v225_v9  ;;  %651 = vmatpush3.bf16.xpose.msk.msra.mxu0 %vm803_vm1, %v649_v11  ;;  %v40_v20 = vld [vmem:[%s996_s1 + $0xa0] sm:$0xff]  ;;  %v41_v21 = vld [vmem:[%s996_s1 + $0xa8] sm:$0xff]  ;;  %v227_v23 = vand.u32 2147483647, %v22_v17  ;;  %v228_v24 = vand.u32 2147483647, %v23_v18  ;;  %v655_v27 = vpack.c.bf16 %v23_v18, %v22_v17 }
   0x6   :  { %696 = vmatprep.subr.msk.bf16.mxu1 %vm803_vm1, %v694_v13  ;;  %v700_v22 = vpack.c.bf16 %v244_v15, %v243_v14  ;;  %654 = vmatprep.subr.msk.bf16.mxu0 %vm803_vm1, %v652_v16  ;;  %v245_v25 = vand.u32 2147483647, %v40_v20  ;;  %v246_v26 = vand.u32 2147483647, %v41_v21  ;;  %v658_v28 = vpack.c.bf16 %v41_v21, %v40_v20  ;;  %v24_v31 = vld [vmem:[%s996_s1 + $0x20] sm:$0xff]  ;;  %v25_v32 = vld [vmem:[%s996_s1 + $0x28] sm:$0xff] }
   0x7   :  { %699 = vmatpush3.bf16.xpose.msk.msra.mxu1 %vm803_vm1, %v697_v19  ;;  %v703_v29 = vpack.c.bf16 %v228_v24, %v227_v23  ;;  %v42_v33 = vld [vmem:[%s996_s1 + $0xb0] sm:$0xff]  ;;  %v43_v34 = vld [vmem:[%s996_s1 + $0xb8] sm:$0xff]  ;;  %v229_v35 = vand.u32 2147483647, %v24_v31  ;;  %v230_v36 = vand.u32 2147483647, %v25_v32  ;;  %v661_v39 = vpack.c.bf16 %v25_v32, %v24_v31 }
   0x8   :  { %702 = vmatprep.subr.msk.bf16.mxu1 %vm803_vm1, %v700_v22  ;;  %v706_v30 = vpack.c.bf16 %v246_v26, %v245_v25  ;;  %v247_v37 = vand.u32 2147483647, %v42_v33  ;;  %v248_v38 = vand.u32 2147483647, %v43_v34  ;;  %v863_v40 = vld [vmem:[%s995_s0 + $0x1] sm:$0x1]  ;;  %v664_v41 = vpack.c.bf16 %v43_v34, %v42_v33 }
   0x9   :  { %644 = vmatprep.mubr.msk.f32.mxu1 %vm54_vm0, %v863_v40  ;;  %v870_v42 = vld [vmem:[%s995_s0] sm:$0x1] }
   0xd   :  { %657 = vmatpush3.bf16.xpose.msk.msra.mxu0 %vm803_vm1, %v655_v27 }
   0xe   :  { %660 = vmatprep.subr.msk.bf16.mxu0 %vm803_vm1, %v658_v28 }
   0xf   :  { %705 = vmatpush3.bf16.xpose.msk.msra.mxu1 %vm803_vm1, %v703_v29 }
  0x10   :  { %708 = vmatprep.subr.msk.bf16.mxu1 %vm803_vm1, %v706_v30 }
  0x11   :  { %8 = vsyncpa [#allocation4], 0  ;;  %v709_v43 = vpack.c.bf16 %v230_v36, %v229_v35  ;;  %610 = vmatprep.mubr.msk.f32.mxu0 %vm54_vm0, %v870_v42  ;;  %v712_v44 = vpack.c.bf16 %v248_v38, %v247_v37  ;;  %v26_v45 = vld [vmem:[%s996_s1 + $0x30] sm:$0xff]  ;;  %v27_v46 = vld [vmem:[%s996_s1 + $0x38] sm:$0xff]  ;;  %v769_v36 = vmov 0.0   ;;  %vm434_vm2 = vcmask 1040384  }
  0x12   :  { %v44_v47 = vld [vmem:[%s996_s1 + $0xc0] sm:$0xff]  ;;  %v45_v48 = vld [vmem:[%s996_s1 + $0xc8] sm:$0xff]  ;;  %v231_v49 = vand.u32 2147483647, %v26_v45  ;;  %v232_v50 = vand.u32 2147483647, %v27_v46  ;;  %v667_v53 = vpack.c.bf16 %v27_v46, %v26_v45 }
  0x13   :  { %v249_v51 = vand.u32 2147483647, %v44_v47  ;;  %v250_v52 = vand.u32 2147483647, %v45_v48  ;;  %v670_v54 = vpack.c.bf16 %v45_v48, %v44_v47  ;;  %v28_v57 = vld [vmem:[%s996_s1 + $0x40] sm:$0xff]  ;;  %v29_v58 = vld [vmem:[%s996_s1 + $0x48] sm:$0xff] }
  0x14   :  { %v715_v55 = vpack.c.bf16 %v232_v50, %v231_v49  ;;  %v46_v59 = vld [vmem:[%s996_s1 + $0xd0] sm:$0xff]  ;;  %v47_v60 = vld [vmem:[%s996_s1 + $0xd8] sm:$0xff]  ;;  %v233_v61 = vand.u32 2147483647, %v28_v57  ;;  %v234_v62 = vand.u32 2147483647, %v29_v58  ;;  %v673_v1 = vpack.c.bf16 %v29_v58, %v28_v57 }
  0x15   :  { %663 = vmatpush3.bf16.xpose.msk.msra.mxu0 %vm803_vm1, %v661_v39  ;;  %v718_v56 = vpack.c.bf16 %v250_v52, %v249_v51  ;;  %v251_v63 = vand.u32 2147483647, %v46_v59  ;;  %v252_v0 = vand.u32 2147483647, %v47_v60  ;;  %v676_v2 = vpack.c.bf16 %v47_v60, %v46_v59  ;;  %v30_v6 = vld [vmem:[%s996_s1 + $0x50] sm:$0xff]  ;;  %v31_v7 = vld [vmem:[%s996_s1 + $0x58] sm:$0xff] }
  0x16   :  { %666 = vmatprep.subr.msk.bf16.mxu0 %vm803_vm1, %v664_v41  ;;  %v721_v4 = vpack.c.bf16 %v234_v62, %v233_v61  ;;  %v48_v8 = vld [vmem:[%s996_s1 + $0xe0] sm:$0xff]  ;;  %v49_v9 = vld [vmem:[%s996_s1 + $0xe8] sm:$0xff]  ;;  %v235_v10 = vand.u32 2147483647, %v30_v6  ;;  %v236_v11 = vand.u32 2147483647, %v31_v7  ;;  %v679_v14 = vpack.c.bf16 %v31_v7, %v30_v6 }
  0x17   :  { %711 = vmatpush3.bf16.xpose.msk.msra.mxu1 %vm803_vm1, %v709_v43  ;;  %v724_v5 = vpack.c.bf16 %v252_v0, %v251_v63  ;;  %v253_v12 = vand.u32 2147483647, %v48_v8  ;;  %v254_v13 = vand.u32 2147483647, %v49_v9  ;;  %v682_v15 = vpack.c.bf16 %v49_v9, %v48_v8  ;;  %v32_v18 = vld [vmem:[%s996_s1 + $0x60] sm:$0xff]  ;;  %v33_v19 = vld [vmem:[%s996_s1 + $0x68] sm:$0xff] }
  0x18   :  { %714 = vmatprep.subr.msk.bf16.mxu1 %vm803_vm1, %v712_v44  ;;  %v727_v16 = vpack.c.bf16 %v236_v11, %v235_v10  ;;  %v50_v20 = vld [vmem:[%s996_s1 + $0xf0] sm:$0xff]  ;;  %v51_v21 = vld [vmem:[%s996_s1 + $0xf8] sm:$0xff]  ;;  %v237_v22 = vand.u32 2147483647, %v32_v18  ;;  %v238_v23 = vand.u32 2147483647, %v33_v19  ;;  %v685_v26 = vpack.c.bf16 %v33_v19, %v32_v18 }
  0x19   :  { %v730_v17 = vpack.c.bf16 %v254_v13, %v253_v12  ;;  %v255_v24 = vand.u32 2147483647, %v50_v20  ;;  %v256_v25 = vand.u32 2147483647, %v51_v21  ;;  %v688_v27 = vpack.c.bf16 %v51_v21, %v50_v20  ;;  %v34_v30 = vld [vmem:[%s996_s1 + $0x70] sm:$0xff]  ;;  %v35_v31 = vld [vmem:[%s996_s1 + $0x78] sm:$0xff] }
  0x1a   :  { %v733_v28 = vpack.c.bf16 %v238_v23, %v237_v22  ;;  %v239_v32 = vand.u32 2147483647, %v34_v30  ;;  %v240_v33 = vand.u32 2147483647, %v35_v31  ;;  %v691_v34 = vpack.c.bf16 %v35_v31, %v34_v30  ;;  %19 = vst [vmem:[#allocation2] sm:$0xf] %v769_v36 }
  0x1b   :  { %v736_v29 = vpack.c.bf16 %v256_v25, %v255_v24  ;;  %v770_v37 = vmov 1983009808   ;;  %v443_v39 = vlaneseq  ;;  %s771_s25 = smov [#allocation3]  }
  0x1c   :  { %v739_v35 = vpack.c.bf16 %v240_v33, %v239_v32  ;;  %v441_v38 = vunpack.c.l.s4 %v770_v37  ;;  %s503_s26 = sshll.u32 %s771_s25, 4  ;;  %s504_s26 = int_to_ptr.vmem [resolvable:$true] %s503_s26 }
  0x1d   :  { %669 = vmatpush3.bf16.xpose.msk.msra.mxu0 %vm803_vm1, %v667_v53  ;;  %v444_v45 = vshrl.u32 %v443_v39, 7  ;;  %p750_p1 = scmp.lt.s32.totalorder %s504_s26, %s504_s26 }
  0x1e   :  { %672 = vmatprep.subr.msk.bf16.mxu0 %vm803_vm1, %v670_v54  ;;  %v442_v44 = vunpack.c.0.s8 %v441_v38  ;;  %v456_v54 = vld [vmem:[%s997_s2] sm:$0x3]  ;;  %s745_s2 = scalar_lea.vmem %s504_s26, 64 }
  0x1f   :  { %717 = vmatpush3.bf16.xpose.msk.msra.mxu1 %vm803_vm1, %v715_v55  ;;  %v464_v59 = vsub.s32 0, %v444_v45  ;;  %v468_v60 = vsub.s32 1, %v444_v45  ;;  %p746_p0 = scmp.ne.s32.totalorder %s504_s26, %s745_s2  ;;  %p751_p2 = scmp.lt.s32.totalorder %s745_s2, %s745_s2 }
  0x20   :  { %720 = vmatprep.subr.msk.bf16.mxu1 %vm803_vm1, %v718_v56 }
  0x21   :  { %v427_v51 = vld [vmem:[#allocation2] sm:$0xf]  ;;  %p752_p3 = por %p751_p2, %p750_p1 }
  0x23   :  { %p753_p4 = pnand %p752_p3, %p746_p0 }
  0x25   :  { %675 = vmatpush3.bf16.xpose.msk.msra.mxu0 %vm803_vm1, %v673_v1 }
  0x26   :  { %678 = vmatprep.subr.msk.bf16.mxu0 %vm803_vm1, %v676_v2 }
  0x27   :  { %723 = vmatpush3.bf16.xpose.msk.msra.mxu1 %vm803_vm1, %v721_v4 }
  0x28   :  { %726 = vmatprep.subr.msk.bf16.mxu1 %vm803_vm1, %v724_v5 }
  0x2d   :  { %681 = vmatpush3.bf16.xpose.msk.msra.mxu0 %vm803_vm1, %v679_v14 }
  0x2e   :  { %684 = vmatprep.subr.msk.bf16.mxu0 %vm803_vm1, %v682_v15 }
  0x2f   :  { %729 = vmatpush3.bf16.xpose.msk.msra.mxu1 %vm803_vm1, %v727_v16 }
  0x30   :  { %732 = vmatprep.subr.msk.bf16.mxu1 %vm803_vm1, %v730_v17 }
  0x35   :  { %687 = vmatpush3.bf16.xpose.msk.msra.mxu0 %vm803_vm1, %v685_v26 }
  0x36   :  { %690 = vmatprep.subr.msk.bf16.mxu0 %vm803_vm1, %v688_v27 }
  0x37   :  { %735 = vmatpush3.bf16.xpose.msk.msra.mxu1 %vm803_vm1, %v733_v28 }
  0x38   :  { %738 = vmatprep.subr.msk.bf16.mxu1 %vm803_vm1, %v736_v29 }
  0x3d   :  { %693 = vmatpush3.bf16.xpose.msk.msra.mxu0 %vm803_vm1, %v691_v34 }
  0x3f   :  { %741 = vmatpush3.bf16.xpose.msk.msra.mxu1 %vm803_vm1, %v739_v35 }
  0x44   :  { %611 = vmatmul.mubr.msk.f32.vlgmr.msra.gmra.mrb[0].mxu0 %vm54_vm0, %v870_v42  ;;  %v445_v42 = vsub.s32 %v442_v44, %v444_v45 }
  0x46   :  { %645 = vmatmul.mubr.msk.f32.vlgmr.msra.gmra.mrb[0].mxu1 %vm54_vm0, %v863_v40 }
 0x117   :  { %v220_v41 = vpop.f32.mrb[0].mxu0 }
 0x118   :  { %v222_v43 = vpop.f32.mrb[1].mxu0 }
 0x119   :  { %v422_v46 = vpop.f32.mrb[0].mxu1 }
 0x11a   :  { %v430_v47 = vrot.slane %v422_v46, 7  ;;  %v424_v3 = vpop.f32.mrb[1].mxu1 }
 0x11b   :  { %v431_v48 = vrot.slane %v424_v3, 7 }
 0x11c   :  { %v435_v49 = vsel %vm434_vm2, %v220_v41, %v430_v47 }
 0x11d   :  { %v436_v50 = vsel %vm434_vm2, %v222_v43, %v431_v48 }
 0x11e   :  { %v439_v40 = vcombine.low %v435_v49, %v436_v50 }
 0x120   :  { %v446_v52 = vrot.slane %v439_v40, %v445_v42 }
 0x122   :  { %v448_v53 = vadd.f32 %v446_v52, %v427_v51 }
 0x124   :  { %449 = vst [vmem:[#allocation2] sm:$0xf] %v448_v53 }
 0x12b   :  { %v453_v55 = vld [vmem:[#allocation2] ss:$2 sm:$0x3]  ;;  %v455_v56 = vld [vmem:[#allocation2 + $0x1] ss:$2 sm:$0x3] }
 0x12c   :  { %v457_v57 = vsub.f32 %v453_v55, %v455_v56  ;;  %v459_v58 = vadd.f32 %v455_v56, %v453_v55 }
 0x12e   :  { %v458_v61 = vadd.f32 %v457_v57, %v456_v54  ;;  %v460_v62 = vadd.f32 %v459_v58, %v456_v54 }
 0x130   :  { %v465_v63 = vrot.slane %v458_v61, %v464_v59  ;;  %v469_v0 = vrot.slane %v458_v61, %v468_v60  ;;  %v476_v1 = vrot.slane %v460_v62, %v464_v59  ;;  %v480_v2 = vrot.slane %v460_v62, %v468_v60 }
 0x132   :  { %v483_v4 = vsel %vm434_vm2, %v465_v63, %v476_v1  ;;  %v484_v5 = vsel %vm434_vm2, %v469_v0, %v480_v2 }
 0x133   :  { %v487_v6 = vcombine.low %v483_v4, %v484_v5 }
 0x135   :  { %577 = vst.sshfl [vmem:[#allocation3] sm:$0x33 pattern:$0x76325410] %v487_v6 }
 0x136   :  { %756 = shalt.err (!%p753_p4)
}
 0x137   :  { %s757_s29 = scalar_lea.hbm %s998_s3, 64 }
 0x138   :  { %p758_p5 = scmp.ne.s32.totalorder %s998_s3, %s757_s29  ;;  %p761_p6 = scmp.lt.u32.totalorder %s757_s29, %s998_s3 }
 0x13a   :  { %p763_p7 = pnand %p761_p6, %p758_p5 }
 0x13c   :  { %766 = shalt.err (!%p763_p7)
}
 0x13d   :  { %506 = dma.vmem_to_hbm [thread:$0]  %s504_s26, 64, %s998_s3, [#allocation4]  }
 0x13e   :  { %767 = dma.done.wait [#allocation4], 64  }
 0x13f   :  { %768 = vsyncadd [#allocation4], 4294967232 }
 0x140   :  { %510 = vsyncpa [#allocation4], 1 }

</bundles_post_ra>
